<compile_context>
chip_gen: v7x
topology: tpu7x:2x2x1
jax: 0.10.0
libtpu: 0.0.40
codegen_flags: <defaults>
</compile_context>

<pallas_src>
import functools

import jax
import jax.numpy as jnp
from jax.experimental import pallas as pl
from jax.experimental.pallas import tpu as pltpu

DELTA = 0.6
GAMMA = 0.5
EPSILON = 1e-6

LANES = 128            # vreg lane width
MAX_BLOCK_ROWS = 8192  # 8192 x 128 f32 = 4 MiB per input block
ACC_SUBLANES = 64      # accumulator slab height (8 independent (8,128) vregs)
VMEM_LIMIT_BYTES = 40 * 1024 * 1024


def _round_up(x, m):
    return ((x + m - 1) // m) * m


def _detect_num_cores():
    """2 TensorCores only on v7x; v5e/v6e have a single TC per chip."""
    try:
        kind = jax.devices()[0].device_kind.lower()
    except Exception:
        return 1
    return 2 if ("v7" in kind or "7x" in kind) else 1


def _focal_sum_kernel(yp_ref, yt_ref, acc_ref, *, delta, gamma, epsilon,
                      block_rows, steps_per_core, n_valid, num_full_blocks,
                      acc_sublanes, emit_fast, emit_masked):
    """Accumulates a (1, acc_sublanes, 128) partial sum of the focal loss."""
    c = pl.program_id(0)   # TensorCore / partial-sum index ("parallel")
    i = pl.program_id(1)   # reduction step within the core ("arbitrary")

    @pl.when(i == 0)
    def _():
        acc_ref[...] = jnp.zeros_like(acc_ref)

    logical_block = c * steps_per_core + i

    def elem_loss(yp, yt):
        if gamma == 0.5:
            # sqrt instead of pow: fewer transcendentals on the single EUP.
            w_pos = jnp.sqrt(1.0 - yp)
            w_neg = jnp.sqrt(yp)
        else:
            w_pos = (1.0 - yp) ** gamma
            w_neg = yp ** gamma
        pos = delta * yt * w_pos * jnp.log(yp + epsilon)
        neg = (1.0 - delta) * (1.0 - yt) * w_neg * jnp.log(1.0 - yp + epsilon)
        return -(pos + neg)

    def accumulate(loss):
        # (block_rows,128) -> (block_rows//acc_sublanes, acc_sublanes, 128) is a
        # pure sublane-tile regrouping; the axis-0 sum is acc_sublanes//8
        # independent chains of VPU vector adds (no XLU cross-lane reduce).
        acc_ref[...] += loss.reshape(
            block_rows // acc_sublanes, acc_sublanes, LANES
        ).sum(axis=0, keepdims=True)

    def fast_path():
        yp = yp_ref[...].astype(jnp.float32)
        yt = yt_ref[...].astype(jnp.float32)
        accumulate(elem_loss(yp, yt))

    def masked_path():
        yp = yp_ref[...].astype(jnp.float32)
        yt = yt_ref[...].astype(jnp.float32)
        start_row = logical_block * block_rows
        row_idx = jax.lax.broadcasted_iota(jnp.int32, (block_rows, LANES), 0)
        lane_idx = jax.lax.broadcasted_iota(jnp.int32, (block_rows, LANES), 1)
        elem_idx = (start_row + row_idx) * LANES + lane_idx
        valid = elem_idx < n_valid
        # Clamp undefined OOB / padded values BEFORE log / sqrt / pow.
        yp = jnp.where(valid, yp, 0.0)
        yt = jnp.where(valid, yt, 0.0)
        accumulate(jnp.where(valid, elem_loss(yp, yt), 0.0))

    if emit_fast and emit_masked:
        @pl.when(logical_block < num_full_blocks)
        def _():
            fast_path()

        @pl.when(logical_block >= num_full_blocks)
        def _():
            masked_path()
    elif emit_fast:
        fast_path()
    else:
        masked_path()


def symmetric_focal_loss(y_pred, y_true_onehot,
                         delta=DELTA, gamma=GAMMA, epsilon=EPSILON):
    """Pallas implementation of SymmetricFocalLoss.forward (mean over all elems)."""
    assert y_pred.shape == y_true_onehot.shape
    n_elems = y_pred.size

    # Keep the original dtype across the pallas_call boundary; tiles are cast
    # to f32 inside the kernel (bf16 inputs keep half the HBM traffic).
    yp_flat = jnp.ravel(y_pred)
    yt_flat = jnp.ravel(y_true_onehot)

    # Lane-align only.  When n % 128 == 0 no pad (and no HBM copy) is needed;
    # otherwise pad by < 128 elements.  Zero pads and Pallas-OOB rows of the
    # partial edge block are masked inside the kernel.
    rem = n_elems % LANES
    if rem:
        pad = LANES - rem
        yp_flat = jnp.pad(yp_flat, (0, pad))
        yt_flat = jnp.pad(yt_flat, (0, pad))
    rows = yp_flat.size // LANES
    if rows < 8:  # tiny inputs: pad up to one (8,128) tile (< 1 KiB of work)
        extra = 8 * LANES - yp_flat.size
        yp_flat = jnp.pad(yp_flat, (0, extra))
        yt_flat = jnp.pad(yt_flat, (0, extra))
        rows = 8
    yp2d = yp_flat.reshape(rows, LANES)
    yt2d = yt_flat.reshape(rows, LANES)

    # block_rows is a multiple of 8 and never exceeds the array, so only the
    # last block can be partial.
    block_rows = min(MAX_BLOCK_ROWS, (rows // 8) * 8)
    acc_sublanes = ACC_SUBLANES if block_rows % ACC_SUBLANES == 0 else 8
    steps = pl.cdiv(rows, block_rows)
    num_cores = max(1, min(_detect_num_cores(), steps))
    steps_per_core = pl.cdiv(steps, num_cores)
    last_block = steps - 1

    elems_per_block = block_rows * LANES
    num_full_blocks = n_elems // elems_per_block        # blocks with no invalid elems
    total_logical_blocks = num_cores * steps_per_core   # includes clamped duplicates
    emit_fast = num_full_blocks > 0
    emit_masked = num_full_blocks < total_logical_blocks

    kernel = functools.partial(
        _focal_sum_kernel,
        delta=float(delta), gamma=float(gamma), epsilon=float(epsilon),
        block_rows=block_rows, steps_per_core=steps_per_core,
        n_valid=n_elems, num_full_blocks=num_full_blocks,
        acc_sublanes=acc_sublanes, emit_fast=emit_fast, emit_masked=emit_masked)

    def in_map(c, i):
        # Clamp to the last real block; duplicated blocks (only when steps does
        # not divide evenly across cores) are fully masked in-kernel.
        return (jnp.minimum(c * steps_per_core + i, last_block), 0)

    partials = pl.pallas_call(
        kernel,
        out_shape=jax.ShapeDtypeStruct((num_cores, acc_sublanes, LANES),
                                       jnp.float32),
        grid_spec=pltpu.PrefetchScalarGridSpec(
            num_scalar_prefetch=0,
            grid=(num_cores, steps_per_core),
            in_specs=[
                pl.BlockSpec((block_rows, LANES), in_map),
                pl.BlockSpec((block_rows, LANES), in_map),
            ],
            out_specs=pl.BlockSpec((1, acc_sublanes, LANES),
                                   lambda c, i: (c, 0, 0)),
        ),
        compiler_params=pltpu.CompilerParams(
            dimension_semantics=("parallel", "arbitrary"),
            vmem_limit_bytes=VMEM_LIMIT_BYTES),
    )(yp2d, yt2d)

    # Tiny final reduce (<= 2*64*128 floats) + mean in plain JAX.
    return jnp.sum(partials) / jnp.float32(n_elems)


def _reference_loss(y_pred, y_true, delta=DELTA, gamma=GAMMA, epsilon=EPSILON):
    pos = -delta * (1.0 - y_pred) ** gamma * y_true * jnp.log(y_pred + epsilon)
    neg = -(1.0 - delta) * y_pred ** gamma * (1.0 - y_true) * jnp.log(
        1.0 - y_pred + epsilon)
    return jnp.mean(pos + neg)


if __name__ == "__main__":
    key = jax.random.PRNGKey(0)
    k1, k2, k3, k4 = jax.random.split(key, 4)

    # Case 1: lane-aligned size (2*4*16*16 = 2048) -> zero-pad-free fast path.
    B, C, H, W = 2, 4, 16, 16
    logits = jax.random.normal(k1, (B, C, H, W), dtype=jnp.float32)
    y_pred = jax.nn.softmax(logits, axis=1)
    labels = jax.random.randint(k2, (B, H, W), 0, C)
    y_true = jax.nn.one_hot(labels, C, axis=1, dtype=jnp.float32)

    loss = jax.block_until_ready(symmetric_focal_loss(y_pred, y_true))
    ref = _reference_loss(y_pred, y_true)
    assert jnp.allclose(loss, ref, rtol=1e-5, atol=1e-6), (loss, ref)

    # Case 2: ragged size (2*3*15*17 = 1530) -> exercises the pl.when-gated
    # masked edge-block path plus the fast path for the full block.
    B2, C2, H2, W2 = 2, 3, 15, 17
    logits2 = jax.random.normal(k3, (B2, C2, H2, W2), dtype=jnp.float32)
    y_pred2 = jax.nn.softmax(logits2, axis=1)
    labels2 = jax.random.randint(k4, (B2, H2, W2), 0, C2)
    y_true2 = jax.nn.one_hot(labels2, C2, axis=1, dtype=jnp.float32)

    loss2 = jax.block_until_ready(symmetric_focal_loss(y_pred2, y_true2))
    ref2 = _reference_loss(y_pred2, y_true2)
    assert jnp.allclose(loss2, ref2, rtol=1e-5, atol=1e-6), (loss2, ref2)

    print("KERNEL_OK")
</pallas_src>

<mosaic_0001>
module attributes {stable_mosaic.version = 11 : i64} {
  func.func @_focal_sum_kernel(%arg0: i32, %arg1: i32, %arg2: memref<16x128xf32, #tpu.memory_space<vmem>>, %arg3: memref<16x128xf32, #tpu.memory_space<vmem>>, %arg4: memref<1x8x128xf32, #tpu.memory_space<vmem>>) attributes {dimension_semantics = [#tpu.dimension_semantics<parallel>, #tpu.dimension_semantics<arbitrary>], iteration_bounds = array<i64: 1, 1>, scalar_prefetch = 0 : i64, scratch_operands = 0 : i64, tpu.core_type = #tpu.core_type<tc>, window_params = [{transform_indices = @transform_0, window_bounds = array<i64: 16, 128>}, {transform_indices = @transform_1, window_bounds = array<i64: 16, 128>}, {transform_indices = @transform_2, window_bounds = array<i64: 1, 8, 128>}]} {
    %c0_i32 = arith.constant 0 : i32
    %0 = arith.cmpi eq, %arg1, %c0_i32 : i32
    %1 = arith.extui %0 : i1 to i32
    %c0_i32_0 = arith.constant 0 : i32
    %2 = arith.cmpi ne, %1, %c0_i32_0 : i32
    scf.if %2 {
      %cst_18 = arith.constant 0.000000e+00 : f32
      %36 = vector.broadcast %cst_18 : f32 to vector<1x8x128xf32>
      %c0_19 = arith.constant 0 : index
      %c0_20 = arith.constant 0 : index
      %c0_21 = arith.constant 0 : index
      %37 = vector.load %arg4[%c0_19, %c0_20, %c0_21] : memref<1x8x128xf32, #tpu.memory_space<vmem>>, vector<1x8x128xf32>
      tpu.vector_store %arg4[%c0_19, %c0_20, %c0_21], %36 {strides = array<i32>} : memref<1x8x128xf32, #tpu.memory_space<vmem>>, vector<1x8x128xf32>,
    } else {
    }
    %c0 = arith.constant 0 : index
    %c0_1 = arith.constant 0 : index
    %3 = vector.load %arg2[%c0, %c0_1] : memref<16x128xf32, #tpu.memory_space<vmem>>, vector<16x128xf32>
    %c0_2 = arith.constant 0 : index
    %c0_3 = arith.constant 0 : index
    %4 = vector.load %arg3[%c0_2, %c0_3] : memref<16x128xf32, #tpu.memory_space<vmem>>, vector<16x128xf32>
    %cst = arith.constant 1.000000e+00 : f32
    %5 = vector.broadcast %cst : f32 to vector<16x128xf32>
    %6 = arith.subf %5, %3 : vector<16x128xf32>
    %7 = math.sqrt %6 : vector<16x128xf32>
    %8 = math.sqrt %3 : vector<16x128xf32>
    %cst_4 = arith.constant 6.000000e-01 : f32
    %9 = vector.broadcast %cst_4 : f32 to vector<16x128xf32>
    %10 = arith.mulf %9, %4 : vector<16x128xf32>
    %11 = arith.mulf %10, %7 : vector<16x128xf32>
    %cst_5 = arith.constant 9.99999997E-7 : f32
    %12 = vector.broadcast %cst_5 : f32 to vector<16x128xf32>
    %13 = arith.addf %3, %12 : vector<16x128xf32>
    %14 = math.log %13 : vector<16x128xf32>
    %15 = arith.mulf %11, %14 : vector<16x128xf32>
    %cst_6 = arith.constant 1.000000e+00 : f32
    %16 = vector.broadcast %cst_6 : f32 to vector<16x128xf32>
    %17 = arith.subf %16, %4 : vector<16x128xf32>
    %cst_7 = arith.constant 4.000000e-01 : f32
    %18 = vector.broadcast %cst_7 : f32 to vector<16x128xf32>
    %19 = arith.mulf %18, %17 : vector<16x128xf32>
    %20 = arith.mulf %19, %8 : vector<16x128xf32>
    %cst_8 = arith.constant 1.000000e+00 : f32
    %21 = vector.broadcast %cst_8 : f32 to vector<16x128xf32>
    %22 = arith.subf %21, %3 : vector<16x128xf32>
    %cst_9 = arith.constant 9.99999997E-7 : f32
    %23 = vector.broadcast %cst_9 : f32 to vector<16x128xf32>
    %24 = arith.addf %22, %23 : vector<16x128xf32>
    %25 = math.log %24 : vector<16x128xf32>
    %26 = arith.mulf %20, %25 : vector<16x128xf32>
    %27 = arith.addf %15, %26 : vector<16x128xf32>
    %cst_10 = arith.constant 0.000000e+00 : f32
    %28 = vector.broadcast %cst_10 : f32 to vector<16x128xf32>
    %29 = arith.subf %28, %27 : vector<16x128xf32>
    %c0_11 = arith.constant 0 : index
    %c0_12 = arith.constant 0 : index
    %c0_13 = arith.constant 0 : index
    %30 = vector.load %arg4[%c0_11, %c0_12, %c0_13] : memref<1x8x128xf32, #tpu.memory_space<vmem>>, vector<1x8x128xf32>
    %31 = vector.shape_cast %29 : vector<16x128xf32> to vector<2x8x128xf32>
    %cst_14 = arith.constant dense<0.000000e+00> : vector<8x128xf32>
    %32 = vector.multi_reduction <add>, %31, %cst_14 [0] : vector<2x8x128xf32> to vector<8x128xf32>
    %33 = vector.shape_cast %32 : vector<8x128xf32> to vector<1x8x128xf32>
    %34 = arith.addf %30, %33 : vector<1x8x128xf32>
    %c0_15 = arith.constant 0 : index
    %c0_16 = arith.constant 0 : index
    %c0_17 = arith.constant 0 : index
    %35 = vector.load %arg4[%c0_15, %c0_16, %c0_17] : memref<1x8x128xf32, #tpu.memory_space<vmem>>, vector<1x8x128xf32>
    tpu.vector_store %arg4[%c0_15, %c0_16, %c0_17], %34 {strides = array<i32>} : memref<1x8x128xf32, #tpu.memory_space<vmem>>, vector<1x8x128xf32>,
    return
  }
  func.func @transform_0(%arg0: i32, %arg1: i32) -> (i32, i32) {
    %c1_i32 = arith.constant 1 : i32
    %0 = arith.muli %arg0, %c1_i32 : i32
    %1 = arith.addi %0, %arg1 : i32
    %c0_i32 = arith.constant 0 : i32
    %2 = arith.minsi %1, %c0_i32 : i32
    %c0_i32_0 = arith.constant 0 : i32
    %c0_i32_1 = arith.constant 0 : i32
    return %2, %c0_i32_0 : i32, i32
  }
  func.func @transform_1(%arg0: i32, %arg1: i32) -> (i32, i32) {
    %c1_i32 = arith.constant 1 : i32
    %0 = arith.muli %arg0, %c1_i32 : i32
    %1 = arith.addi %0, %arg1 : i32
    %c0_i32 = arith.constant 0 : i32
    %2 = arith.minsi %1, %c0_i32 : i32
    %c0_i32_0 = arith.constant 0 : i32
    %c0_i32_1 = arith.constant 0 : i32
    return %2, %c0_i32_0 : i32, i32
  }
  func.func @transform_2(%arg0: i32, %arg1: i32) -> (i32, i32, i32) {
    %c0_i32 = arith.constant 0 : i32
    %c0_i32_0 = arith.constant 0 : i32
    %c0_i32_1 = arith.constant 0 : i32
    return %arg0, %c0_i32, %c0_i32_0 : i32, i32, i32
  }
}

</mosaic_0001>

<bundles_post_ra>
// kernel: tpu_custom_call.1
= control target key start
LH: loop header
LB: loop body
LE: loop exit
PB: predicated region body
PF: predicated region fallthrough
CT: control target
= control target key end

     0   :  { %7 = vsyncpa [#allocation3], 0  ;;  %s310_s0 = inlined_call_operand.hbm [shape: f32[16,128], index: 0, kind: input, shape index: {}]   ;;  %s311_s1 = inlined_call_operand.hbm [shape: f32[16,128], index: 1, kind: input, shape index: {}]   ;;  %s312_s2 = inlined_call_operand.hbm [shape: f32[1,8,128], index: 2, kind: output, shape index: {}]  }
   0x1   :  { %8 = vsyncpa [#allocation6], 0 }
   0x2   :  { %9 = vsyncpa [#allocation4], 0  ;;  %s247_s9 = smov [#allocation2]   ;;  %s175_s13 = scalar_lea.hbm %s310_s0, 256 }
   0x3   :  { %s21_s10 = sshll.u32 %s247_s9, 4  ;;  %p176_p0 = scmp.ne.s32.totalorder %s310_s0, %s175_s13  ;;  %s22_s10 = int_to_ptr.vmem [resolvable:$true] %s21_s10 }
   0x4   :  { %p179_p1 = scmp.lt.u32.totalorder %s175_s13, %s310_s0 }
   0x6   :  { %p181_p2 = pnand %p179_p1, %p176_p0 }
   0x8   :  { %184 = shalt.err (!%p181_p2)
}
   0x9   :  { %s185_s18 = scalar_lea.vmem %s22_s10, 256  ;;  %p190_p4 = scmp.lt.s32.totalorder %s22_s10, %s22_s10 }
   0xa   :  { %p186_p3 = scmp.ne.s32.totalorder %s22_s10, %s185_s18  ;;  %p191_p5 = scmp.lt.s32.totalorder %s185_s18, %s185_s18 }
   0xc   :  { %p192_p6 = por %p191_p5, %p190_p4 }
   0xe   :  { %p193_p7 = pnand %p192_p6, %p186_p3 }
  0x10   :  { %196 = shalt.err (!%p193_p7)
}
  0x11   :  { %s248_s19 = smov 128   ;;  %s249_s20 = smov 8  }
  0x12   :  { %27 = dma.hbm_to_vmem [thread:$0]  %s310_s0, 256, %s22_s10, [#allocation3], %s248_s19, %s248_s19, %s249_s20  }
  0x13   :  { %s250_s23 = smov [#allocation5]   ;;  %s197_s27 = scalar_lea.hbm %s311_s1, 256 }
  0x14   :  { %s39_s24 = sshll.u32 %s250_s23, 4  ;;  %p198_p8 = scmp.ne.s32.totalorder %s311_s1, %s197_s27  ;;  %s40_s24 = int_to_ptr.vmem [resolvable:$true] %s39_s24 }
  0x15   :  { %p201_p9 = scmp.lt.u32.totalorder %s197_s27, %s311_s1 }
  0x17   :  { %p203_p10 = pnand %p201_p9, %p198_p8 }
  0x19   :  { %206 = shalt.err (!%p203_p10)
}
  0x1a   :  { %s207_s4 = scalar_lea.vmem %s40_s24, 256  ;;  %p212_p12 = scmp.lt.s32.totalorder %s40_s24, %s40_s24 }
  0x1b   :  { %p208_p11 = scmp.ne.s32.totalorder %s40_s24, %s207_s4  ;;  %p213_p13 = scmp.lt.s32.totalorder %s207_s4, %s207_s4 }
  0x1d   :  { %p214_p0 = por %p213_p13, %p212_p12 }
  0x1f   :  { %p215_p1 = pnand %p214_p0, %p208_p11 }
  0x21   :  { %218 = shalt.err (!%p215_p1)
}
  0x22   :  { %45 = dma.hbm_to_vmem [thread:$0]  %s311_s1, 256, %s40_s24, [#allocation6], %s248_s19, %s248_s19, %s249_s20  }
  0x23   :  { %241 = dma.done.wait [#allocation3], 256  }
  0x24   :  { %242 = vsyncadd [#allocation3], 4294967040 }
  0x25   :  { %243 = dma.done.wait [#allocation6], 256  }
  0x26   :  { %244 = vsyncadd [#allocation6], 4294967040  ;;  %v65_v0 = vld [vmem:[#allocation2] sm:$0xff]  ;;  %v66_v1 = vld [vmem:[#allocation2 + $0x8] sm:$0xff]  ;;  %s251_s1 = smov [#allocation7]  }
  0x27   :  { %v69_v2 = vsub.f32 1.0, %v65_v0  ;;  %v70_v3 = vsub.f32 1.0, %v66_v1  ;;  %159 = vrsqrt.f32 %v65_v0  ;;  %v103_v4 = vadd.f32 1e-06, %v65_v0  ;;  %v67_v8 = vld [vmem:[#allocation5] sm:$0xff]  ;;  %v68_v9 = vld [vmem:[#allocation5 + $0x8] sm:$0xff] }
  0x28   :  { %161 = vrsqrt.f32 %v66_v1  ;;  %v104_v5 = vadd.f32 1e-06, %v66_v1  ;;  %vm87_vm0 = vcmp.eq.f32.partialorder %v65_v0, inf  ;;  %vm89_vm1 = vcmp.eq.f32.partialorder %v65_v0, 0.0  ;;  %s139_s6 = sshll.u32 %s251_s1, 4  ;;  %s140_s6 = int_to_ptr.vmem [resolvable:$true] %s139_s6 }
  0x29   :  { %163 = vrsqrt.f32 %v69_v2  ;;  %v117_v6 = vadd.f32 1e-06, %v69_v2  ;;  %v118_v7 = vadd.f32 1e-06, %v70_v3  ;;  %v90_v10 = vand.u32 2147483648, %v65_v0  ;;  %s219_s7 = scalar_lea.vmem %s140_s6, 128  ;;  %p224_p3 = scmp.lt.s32.totalorder %s140_s6, %s140_s6 }
  0x2a   :  { %165 = vrsqrt.f32 %v70_v3  ;;  %vm94_vm2 = vcmp.eq.f32.partialorder %v66_v1, inf  ;;  %vm73_vm3 = vcmp.eq.f32.partialorder %v69_v2, inf  ;;  %vm75_vm4 = vcmp.eq.f32.partialorder %v69_v2, 0.0  ;;  %p220_p2 = scmp.ne.s32.totalorder %s140_s6, %s219_s7  ;;  %p225_p4 = scmp.lt.s32.totalorder %s219_s7, %s219_s7 }
  0x2b   :  { %167 = vlog2.f32 %v103_v4  ;;  %v111_v12 = vsub.f32 1.0, %v67_v8  ;;  %v76_v14 = vand.u32 2147483648, %v69_v2  ;;  %vm80_vm5 = vcmp.eq.f32.partialorder %v70_v3, inf }
  0x2c   :  { %169 = vlog2.f32 %v104_v5  ;;  %v112_v16 = vsub.f32 1.0, %v68_v9  ;;  %vm82_vm6 = vcmp.eq.f32.partialorder %v70_v3, 0.0  ;;  %v83_v18 = vand.u32 2147483648, %v70_v3  ;;  %p226_p5 = por %p225_p4, %p224_p3 }
  0x2d   :  { %171 = vlog2.f32 %v117_v6  ;;  %v97_v20 = vand.u32 2147483648, %v66_v1  ;;  %vm96_vm7 = vcmp.eq.f32.partialorder %v66_v1, 0.0  ;;  %v99_v24 = vmul.f32 0.6, %v67_v8 }
  0x2e   :  { %173 = vlog2.f32 %v118_v7  ;;  %v100_v27 = vmul.f32 0.6, %v68_v9  ;;  %v113_v28 = vmul.f32 0.4, %v111_v12  ;;  %v114_v31 = vmul.f32 0.4, %v112_v16  ;;  %p227_p6 = pnand %p226_p5, %p220_p2 }
  0x31   :  { %v160_v11 = vpop.eup %159 }
  0x32   :  { %v162_v13 = vpop.eup %161  ;;  %v86_v15 = vmul.f32 %v160_v11, %v65_v0 }
  0x33   :  { %v164_v17 = vpop.eup %163  ;;  %v93_v19 = vmul.f32 %v162_v13, %v66_v1 }
  0x34   :  { %v166_v21 = vpop.eup %165  ;;  %v72_v22 = vmul.f32 %v164_v17, %v69_v2  ;;  %v88_v23 = vsel %vm87_vm0, %v65_v0, %v86_v15 }
  0x35   :  { %v79_v25 = vmul.f32 %v166_v21, %v70_v3  ;;  %v95_v26 = vsel %vm94_vm2, %v66_v1, %v93_v19  ;;  %v91_v30 = vsel %vm89_vm1, %v90_v10, %v88_v23  ;;  %v168_v35 = vpop.eup %167 }
  0x36   :  { %v74_v29 = vsel %vm73_vm3, %v69_v2, %v72_v22  ;;  %v98_v34 = vsel %vm96_vm7, %v97_v20, %v95_v26  ;;  %v170_v38 = vpop.eup %169  ;;  %v106_v40 = vmul.f32 0.6931472, %v168_v35  ;;  %v115_v41 = vmul.f32 %v113_v28, %v91_v30 }
  0x37   :  { %v77_v32 = vsel %vm75_vm4, %v76_v14, %v74_v29  ;;  %v81_v33 = vsel %vm80_vm5, %v70_v3, %v79_v25  ;;  %v172_v42 = vpop.eup %171  ;;  %v108_v43 = vmul.f32 0.6931472, %v170_v38  ;;  %v116_v44 = vmul.f32 %v114_v31, %v98_v34 }
  0x38   :  { %v84_v36 = vsel %vm82_vm6, %v83_v18, %v81_v33  ;;  %v101_v37 = vmul.f32 %v99_v24, %v77_v32  ;;  %v174_v45 = vpop.eup %173  ;;  %v120_v47 = vmul.f32 0.6931472, %v172_v42 }
  0x39   :  { %v102_v39 = vmul.f32 %v100_v27, %v84_v36  ;;  %v122_v49 = vmul.f32 0.6931472, %v174_v45 }
  0x3a   :  { %v109_v46 = vmul.f32 %v106_v40, %v101_v37  ;;  %v123_v50 = vmul.f32 %v120_v47, %v115_v41 }
  0x3b   :  { %v110_v48 = vmul.f32 %v108_v43, %v102_v39  ;;  %v124_v51 = vmul.f32 %v122_v49, %v116_v44 }
  0x3c   :  { %v125_v52 = vadd.f32 %v123_v50, %v109_v46 }
  0x3d   :  { %v126_v53 = vadd.f32 %v124_v51, %v110_v48 }
  0x3e   :  { %v127_v54 = vsub.f32 0.0, %v125_v52 }
  0x3f   :  { %v128_v55 = vsub.f32 0.0, %v126_v53 }
  0x41   :  { %v130_v56 = vadd.f32 %v128_v55, %v127_v54 }
  0x43   :  { %132 = vst [vmem:[#allocation7] sm:$0xff] %v130_v56 }
  0x44   :  { %230 = shalt.err (!%p227_p6)
}
  0x45   :  { %s231_s10 = scalar_lea.hbm %s312_s2, 128 }
  0x46   :  { %p232_p7 = scmp.ne.s32.totalorder %s312_s2, %s231_s10  ;;  %p235_p8 = scmp.lt.u32.totalorder %s231_s10, %s312_s2 }
  0x48   :  { %p237_p9 = pnand %p235_p8, %p232_p7 }
  0x4a   :  { %240 = shalt.err (!%p237_p9)
}
  0x4b   :  { %142 = dma.vmem_to_hbm [thread:$0]  %s140_s6, 128, %s312_s2, [#allocation4]  }
  0x4c   :  { %245 = dma.done.wait [#allocation4], 128  }
  0x4d   :  { %246 = vsyncadd [#allocation4], 4294967168 }
  0x4e   :  { %146 = vsyncpa [#allocation3], 1 }
  0x4f   :  { %147 = vsyncpa [#allocation6], 1 }
  0x50   :  { %148 = vsyncpa [#allocation4], 1 }

</bundles_post_ra>
